<compile_context>
chip_gen: v6e
topology: v6e:2x2x1
jax: 0.10.0
libtpu: 0.0.40
codegen_flags: <defaults>
</compile_context>

<pallas_src>
import functools

import jax
import jax.numpy as jnp
from jax import lax
from jax.experimental import pallas as pl
from jax.experimental.pallas import tpu as pltpu


def _cbn_kernel(cond_ref, wg_ref, wb_ref, x_ref, out_ref, *, eps, inv_n):
    """One channel tile of conditional batch-norm.

    cond_ref : (B, K1)       cond with a ones column appended (Linear bias folded in)
    wg_ref   : (1, K1, tc)   gamma weight tile, K on sublanes (host pre-transposed)
    wb_ref   : (1, K1, tc)   beta  weight tile
    x_ref    : (B, tc, HW)   input channel tile, spatial flattened (lane-dense)
    out_ref  : (B, tc, HW)
    """
    # ---- batch statistics (training-mode BatchNorm2d, affine=False) --------------
    # Two-pass mean/var for numerical stability; x_ref is re-read per pass so the
    # centered full-block temporary is consumed by the reduction and never kept live
    # into the epilogue (VMEM reads are cheap: 3 vld/cycle).
    x = x_ref[...].astype(jnp.float32)
    mean = jnp.sum(jnp.sum(x, axis=2, keepdims=True), axis=0, keepdims=True) * inv_n   # (1,tc,1)
    c = x_ref[...].astype(jnp.float32) - mean
    var = jnp.sum(jnp.sum(c * c, axis=2, keepdims=True), axis=0, keepdims=True) * inv_n
    inv_std = lax.rsqrt(var + eps)                                                      # (1,tc,1)

    # ---- conditional affine: (gamma, beta) = Linear(cond).chunk(2) ----------------
    # RHS has K on sublanes (feeds the MXU natively, no per-step vxpose); the Linear
    # bias rides in via the ones column of cond, so there are no per-step bias DMAs.
    dn = (((1,), (0,)), ((), ()))
    gamma = lax.dot_general(cond_ref[...], wg_ref[0], dn,
                            preferred_element_type=jnp.float32)                         # (B, tc)
    beta = lax.dot_general(cond_ref[...], wb_ref[0], dn,
                           preferred_element_type=jnp.float32)                          # (B, tc)

    # ---- fold BN + affine into a single per-element FMA ---------------------------
    #   gamma * (x - mean) * inv_std + beta  ==  x * a + b
    a = gamma[:, :, None] * inv_std                                                     # (B,tc,1)
    b = beta[:, :, None] - a * mean                                                     # (B,tc,1)
    # Stats/scale math stays f32 on every chip; only the store casts to the output
    # dtype (safe on v5e's f32-only VALU; bf16 store halves writeback bytes on v6e/v7x).
    out_ref[...] = (x_ref[...].astype(jnp.float32) * a + b).astype(out_ref.dtype)


def _choose_channel_tile(B, C, HW, itemsize, vmem_budget_bytes):
    """Largest layout-aligned channel tile whose working set fits the VMEM budget,
    preferring >= 2 grid steps so the 'parallel' axis feeds both v7x TensorCores."""
    align = 8 if itemsize >= 4 else (16 if itemsize == 2 else 32)
    # Per-channel VMEM working set: double-buffered input + output blocks plus ~3
    # f32 full-block temporaries inside the kernel body.
    per_chan = B * HW * (4 * itemsize + 3 * 4)
    cands = [t for t in range(align, C + 1, align) if C % t == 0]
    if not cands:
        # TODO(synk): C not a multiple of the layout alignment -> single monolithic
        # block; pad channels (or add a reduction-grid path) if this overflows VMEM.
        return C
    fits = [t for t in cands if t * per_chan <= vmem_budget_bytes]
    if not fits:
        # TODO(synk): even the minimum aligned tile overflows the budget (huge B*HW);
        # restructure into a stats-accumulation grid axis ("arbitrary", pl.when
        # init/finalize into VMEM scratch) + normalize pass instead of shrinking tc.
        return cands[0]
    multi_step = [t for t in fits if C // t >= 2]
    return max(multi_step) if multi_step else max(fits)


def conditional_batchnorm_forward(x, cond, weight, bias, *, eps=1e-5):
    """ConditionalBatchNorm forward (cond_dim > 0, num_classes == 0 branch).

    x:      (B, C, H, W)
    cond:   (B, cond_dim)
    weight: (2*C, cond_dim)   -- nn.Linear(cond_dim, 2*C) weight in (out, in) layout
    bias:   (2*C,)
    Returns gamma * batchnorm(x) + beta with (gamma, beta) = (cond @ weight.T + bias).chunk(2).
    Training-mode batch statistics; running-stats updates / eval mode live outside this kernel.
    """
    B, C, H, W = x.shape
    HW = H * W
    cond_dim = cond.shape[1]
    itemsize = jnp.dtype(x.dtype).itemsize

    # ---- VMEM-budgeted channel tiling --------------------------------------------
    try:
        vmem_phys = int(pltpu.get_tpu_info().vmem_capacity_bytes)
    except Exception:
        vmem_phys = 64 * 1024 * 1024          # v7x per-TensorCore VMEM (smallest generation)
    vmem_budget = int(vmem_phys * 0.55)       # target for the pipelined block working set
    vmem_limit = int(vmem_phys * 0.80)        # scoped limit handed to Mosaic

    tc = _choose_channel_tile(B, C, HW, itemsize, vmem_budget)
    n_tiles = C // tc
    grid = (n_tiles,)

    # Lane-dense layout: flatten spatial into the last dim. If HW % 128 != 0 (7x7,
    # 14x14 maps) the store path falls back to masked vst — correct, just slower.
    x3 = x.reshape(B, C, HW)

    # Fold the Linear bias into the matmul (ones column on cond, bias row on weights)
    # and pre-transpose the tiny weight halves so K sits on sublanes. One-time,
    # negligible host-side work.
    K1 = cond_dim + 1
    cond_aug = jnp.concatenate(
        [cond.astype(jnp.float32), jnp.ones((B, 1), jnp.float32)], axis=1)              # (B, K1)
    wg = jnp.concatenate([weight[:C].T, bias[:C][None, :]], axis=0).astype(jnp.float32)  # (K1, C)
    wb = jnp.concatenate([weight[C:].T, bias[C:][None, :]], axis=0).astype(jnp.float32)  # (K1, C)
    # (n_tiles, K1, tc): per-tile blocks whose last two dims are full-extent -> layout-legal
    # for any tc (no 128-divisibility requirement on the channel tile).
    wg3 = wg.reshape(K1, n_tiles, tc).transpose(1, 0, 2)
    wb3 = wb.reshape(K1, n_tiles, tc).transpose(1, 0, 2)

    kernel = functools.partial(_cbn_kernel, eps=float(eps), inv_n=1.0 / float(B * HW))

    out3 = pl.pallas_call(
        kernel,
        out_shape=jax.ShapeDtypeStruct((B, C, HW), x.dtype),
        grid_spec=pltpu.PrefetchScalarGridSpec(
            num_scalar_prefetch=0,
            grid=grid,
            in_specs=[
                pl.BlockSpec((B, K1), lambda ci: (0, 0)),          # cond (+ones): DMA'd once
                pl.BlockSpec((1, K1, tc), lambda ci: (ci, 0, 0)),  # gamma weight tile
                pl.BlockSpec((1, K1, tc), lambda ci: (ci, 0, 0)),  # beta weight tile
                pl.BlockSpec((B, tc, HW), lambda ci: (0, ci, 0)),  # x channel tile
            ],
            out_specs=pl.BlockSpec((B, tc, HW), lambda ci: (0, ci, 0)),
        ),
        compiler_params=pltpu.CompilerParams(
            dimension_semantics=("parallel",),
            vmem_limit_bytes=vmem_limit,
        ),
    )(cond_aug, wg3, wb3, x3)

    return out3.reshape(B, C, H, W)


if __name__ == "__main__":
    batch, channels, height, width, cond_dim = 8, 16, 16, 16, 8
    eps = 1e-5

    key = jax.random.PRNGKey(0)
    k_x, k_c, k_w = jax.random.split(key, 3)

    x = jax.random.normal(k_x, (batch, channels, height, width), jnp.float32)
    cond = jax.random.normal(k_c, (batch, cond_dim), jnp.float32)

    # cond_map = nn.Linear(cond_dim, 2*channels): small random weight,
    # gamma bias ~ 1, beta bias ~ 0 (standard conditional-BN style init).
    weight = 0.02 * jax.random.normal(k_w, (2 * channels, cond_dim), jnp.float32)
    bias = jnp.concatenate([jnp.ones((channels,), jnp.float32),
                            jnp.zeros((channels,), jnp.float32)])

    out = conditional_batchnorm_forward(x, cond, weight, bias, eps=eps)
    jax.block_until_ready(out)

    # ---- plain-JAX reference (training-mode BatchNorm2d, affine=False) ------------
    mean = x.mean(axis=(0, 2, 3), keepdims=True)
    var = ((x - mean) ** 2).mean(axis=(0, 2, 3), keepdims=True)
    x_hat = (x - mean) / jnp.sqrt(var + eps)
    gb = cond @ weight.T + bias
    gamma = gb[:, :channels][:, :, None, None]
    beta = gb[:, channels:][:, :, None, None]
    ref = gamma * x_hat + beta

    assert out.shape == x.shape
    err = float(jnp.max(jnp.abs(out - ref)))
    assert err < 1e-3, f"max abs err {err}"

    print("KERNEL_OK")
</pallas_src>

<mosaic_0001>
module attributes {stable_mosaic.version = 11 : i64} {
  func.func @_cbn_kernel(%arg0: i32, %arg1: memref<8x9xf32, #tpu.memory_space<vmem>>, %arg2: memref<1x9x8xf32, #tpu.memory_space<vmem>>, %arg3: memref<1x9x8xf32, #tpu.memory_space<vmem>>, %arg4: memref<8x8x256xf32, #tpu.memory_space<vmem>>, %arg5: memref<8x8x256xf32, #tpu.memory_space<vmem>>) attributes {dimension_semantics = [#tpu.dimension_semantics<parallel>], iteration_bounds = array<i64: 2>, scalar_prefetch = 0 : i64, scratch_operands = 0 : i64, tpu.core_type = #tpu.core_type<tc>, window_params = [{pipeline_mode = #tpu.pipeline_mode<synchronous>, transform_indices = @transform_0, window_bounds = array<i64: 8, 9>}, {transform_indices = @transform_1, window_bounds = array<i64: 1, 9, 8>}, {transform_indices = @transform_2, window_bounds = array<i64: 1, 9, 8>}, {transform_indices = @transform_3, window_bounds = array<i64: 8, 8, 256>}, {transform_indices = @transform_4, window_bounds = array<i64: 8, 8, 256>}]} {
    %c0 = arith.constant 0 : index
    %c0_0 = arith.constant 0 : index
    %c0_1 = arith.constant 0 : index
    %0 = vector.load %arg4[%c0, %c0_0, %c0_1] : memref<8x8x256xf32, #tpu.memory_space<vmem>>, vector<8x8x256xf32>
    %cst = arith.constant dense<0.000000e+00> : vector<8x8xf32>
    %1 = vector.multi_reduction <add>, %0, %cst [2] : vector<8x8x256xf32> to vector<8x8xf32>
    %2 = vector.shape_cast %1 : vector<8x8xf32> to vector<8x8x1xf32>
    %cst_2 = arith.constant dense<0.000000e+00> : vector<8x1xf32>
    %3 = vector.multi_reduction <add>, %2, %cst_2 [0] : vector<8x8x1xf32> to vector<8x1xf32>
    %4 = vector.shape_cast %3 : vector<8x1xf32> to vector<1x8x1xf32>
    %cst_3 = arith.constant 4.8828125E-4 : f32
    %5 = vector.broadcast %cst_3 : f32 to vector<1x8x1xf32>
    %6 = arith.mulf %4, %5 : vector<1x8x1xf32>
    %c0_4 = arith.constant 0 : index
    %c0_5 = arith.constant 0 : index
    %c0_6 = arith.constant 0 : index
    %7 = vector.load %arg4[%c0_4, %c0_5, %c0_6] : memref<8x8x256xf32, #tpu.memory_space<vmem>>, vector<8x8x256xf32>
    %8 = vector.broadcast %6 : vector<1x8x1xf32> to vector<8x8x256xf32>
    %9 = arith.subf %7, %8 : vector<8x8x256xf32>
    %10 = arith.mulf %9, %9 : vector<8x8x256xf32>
    %cst_7 = arith.constant dense<0.000000e+00> : vector<8x8xf32>
    %11 = vector.multi_reduction <add>, %10, %cst_7 [2] : vector<8x8x256xf32> to vector<8x8xf32>
    %12 = vector.shape_cast %11 : vector<8x8xf32> to vector<8x8x1xf32>
    %cst_8 = arith.constant dense<0.000000e+00> : vector<8x1xf32>
    %13 = vector.multi_reduction <add>, %12, %cst_8 [0] : vector<8x8x1xf32> to vector<8x1xf32>
    %14 = vector.shape_cast %13 : vector<8x1xf32> to vector<1x8x1xf32>
    %cst_9 = arith.constant 4.8828125E-4 : f32
    %15 = vector.broadcast %cst_9 : f32 to vector<1x8x1xf32>
    %16 = arith.mulf %14, %15 : vector<1x8x1xf32>
    %cst_10 = arith.constant 9.99999974E-6 : f32
    %17 = vector.broadcast %cst_10 : f32 to vector<1x8x1xf32>
    %18 = arith.addf %16, %17 : vector<1x8x1xf32>
    %19 = math.rsqrt %18 : vector<1x8x1xf32>
    %c0_11 = arith.constant 0 : index
    %c0_12 = arith.constant 0 : index
    %20 = vector.load %arg1[%c0_11, %c0_12] : memref<8x9xf32, #tpu.memory_space<vmem>>, vector<8x9xf32>
    %c0_13 = arith.constant 0 : index
    %c0_14 = arith.constant 0 : index
    %c0_15 = arith.constant 0 : index
    %21 = vector.load %arg2[%c0_13, %c0_14, %c0_15] : memref<1x9x8xf32, #tpu.memory_space<vmem>>, vector<1x9x8xf32>
    %22 = vector.shape_cast %21 : vector<1x9x8xf32> to vector<9x8xf32>
    %cst_16 = arith.constant dense<0.000000e+00> : vector<8x8xf32>
    %23 = tpu.matmul %20, %22, %cst_16 {dimension_numbers = #tpu.dot_dimension_numbers<[1], [0], [0], [1], [0, 0, 1, 1], [], []>} : vector<8x9xf32>, vector<9x8xf32>, vector<8x8xf32> -> vector<8x8xf32>
    %c0_17 = arith.constant 0 : index
    %c0_18 = arith.constant 0 : index
    %24 = vector.load %arg1[%c0_17, %c0_18] : memref<8x9xf32, #tpu.memory_space<vmem>>, vector<8x9xf32>
    %c0_19 = arith.constant 0 : index
    %c0_20 = arith.constant 0 : index
    %c0_21 = arith.constant 0 : index
    %25 = vector.load %arg3[%c0_19, %c0_20, %c0_21] : memref<1x9x8xf32, #tpu.memory_space<vmem>>, vector<1x9x8xf32>
    %26 = vector.shape_cast %25 : vector<1x9x8xf32> to vector<9x8xf32>
    %cst_22 = arith.constant dense<0.000000e+00> : vector<8x8xf32>
    %27 = tpu.matmul %24, %26, %cst_22 {dimension_numbers = #tpu.dot_dimension_numbers<[1], [0], [0], [1], [0, 0, 1, 1], [], []>} : vector<8x9xf32>, vector<9x8xf32>, vector<8x8xf32> -> vector<8x8xf32>
    %28 = vector.shape_cast %23 : vector<8x8xf32> to vector<8x8x1xf32>
    %29 = vector.broadcast %19 : vector<1x8x1xf32> to vector<8x8x1xf32>
    %30 = arith.mulf %28, %29 : vector<8x8x1xf32>
    %31 = vector.shape_cast %27 : vector<8x8xf32> to vector<8x8x1xf32>
    %32 = vector.broadcast %6 : vector<1x8x1xf32> to vector<8x8x1xf32>
    %33 = arith.mulf %30, %32 : vector<8x8x1xf32>
    %34 = arith.subf %31, %33 : vector<8x8x1xf32>
    %c0_23 = arith.constant 0 : index
    %c0_24 = arith.constant 0 : index
    %c0_25 = arith.constant 0 : index
    %35 = vector.load %arg4[%c0_23, %c0_24, %c0_25] : memref<8x8x256xf32, #tpu.memory_space<vmem>>, vector<8x8x256xf32>
    %36 = vector.broadcast %30 : vector<8x8x1xf32> to vector<8x8x256xf32>
    %37 = arith.mulf %35, %36 : vector<8x8x256xf32>
    %38 = vector.broadcast %34 : vector<8x8x1xf32> to vector<8x8x256xf32>
    %39 = arith.addf %37, %38 : vector<8x8x256xf32>
    %c0_26 = arith.constant 0 : index
    %c0_27 = arith.constant 0 : index
    %c0_28 = arith.constant 0 : index
    %40 = vector.load %arg5[%c0_26, %c0_27, %c0_28] : memref<8x8x256xf32, #tpu.memory_space<vmem>>, vector<8x8x256xf32>
    tpu.vector_store %arg5[%c0_26, %c0_27, %c0_28], %39 {strides = array<i32>} : memref<8x8x256xf32, #tpu.memory_space<vmem>>, vector<8x8x256xf32>,
    return
  }
  func.func @transform_0(%arg0: i32) -> (i32, i32) {
    %c0_i32 = arith.constant 0 : i32
    %c0_i32_0 = arith.constant 0 : i32
    %c0_i32_1 = arith.constant 0 : i32
    return %c0_i32, %c0_i32_0 : i32, i32
  }
  func.func @transform_1(%arg0: i32) -> (i32, i32, i32) {
    %c0_i32 = arith.constant 0 : i32
    %c0_i32_0 = arith.constant 0 : i32
    %c0_i32_1 = arith.constant 0 : i32
    return %arg0, %c0_i32, %c0_i32_0 : i32, i32, i32
  }
  func.func @transform_2(%arg0: i32) -> (i32, i32, i32) {
    %c0_i32 = arith.constant 0 : i32
    %c0_i32_0 = arith.constant 0 : i32
    %c0_i32_1 = arith.constant 0 : i32
    return %arg0, %c0_i32, %c0_i32_0 : i32, i32, i32
  }
  func.func @transform_3(%arg0: i32) -> (i32, i32, i32) {
    %c0_i32 = arith.constant 0 : i32
    %c0_i32_0 = arith.constant 0 : i32
    %c0_i32_1 = arith.constant 0 : i32
    return %c0_i32, %arg0, %c0_i32_0 : i32, i32, i32
  }
  func.func @transform_4(%arg0: i32) -> (i32, i32, i32) {
    %c0_i32 = arith.constant 0 : i32
    %c0_i32_0 = arith.constant 0 : i32
    %c0_i32_1 = arith.constant 0 : i32
    return %c0_i32, %arg0, %c0_i32_0 : i32, i32, i32
  }
}

</mosaic_0001>

<bundles_post_ra>
// kernel: tpu_custom_call.1
= control target key start
LH: loop header
LB: loop body
LE: loop exit
PB: predicated region body
PF: predicated region fallthrough
CT: control target
= control target key end

     0   :  { %9 = vsyncpa [#allocation3], 0  ;;  %s1370_s0 = inlined_call_operand.vmem [shape: f32[8,9], index: 0, kind: input, shape index: {}]   ;;  %s1371_s1 = inlined_call_operand.vmem [shape: f32[2,9,8], index: 1, kind: input, shape index: {}]   ;;  %s1372_s2 = inlined_call_operand.vmem [shape: f32[2,9,8], index: 2, kind: input, shape index: {}]   ;;  %s1373_s3 = inlined_call_operand.hbm [shape: f32[8,16,256], index: 3, kind: input, shape index: {}]   ;;  %s1374_s4 = inlined_call_operand.hbm [shape: f32[8,16,256], index: 4, kind: output, shape index: {}]  }
   0x1   :  { %11 = vsyncpa [#allocation3 + $0x1], 0 }
   0x2   :  { %12 = vsyncpa [#allocation4], 0 }
   0x3   :  { %14 = vsyncpa [#allocation4 + $0x1], 0  ;;  %s1052_s15 = smov 0   ;;  %s1054_s16 = smov 0  }
   0x4   :  { %s1056_s17 = smov 0   ;;  %s1058_s18 = smov 0  }
   0x5 LB: > { %s1073_s19 = sadd.s32 4294967295, %s1015_s18   ;;  %s821_s20 = sadd.s32 4294967294, %s1015_s18   ;;  %s1015_s18 = sphi %s1058_s18, %s1390_s18   ;;  %s1011_s17 = sphi %s1056_s17, %s1389_s17   ;;  %s1007_s16 = sphi %s1054_s16, %s1388_s16   ;;  %s1003_s15 = sphi %s1052_s15, %s1387_s15  }
   0x6   : > { %s1077_s21 = sadd.s32 1, %s1015_s18   ;;  %s100_s22 = sadd.s32 1, %s1011_s17 }
   0x7   : > { %s97_s23 = ssub.s32 %s1015_s18, %s1077_s21  ;;  %p107_p0 = scmp.ne.s32.totalorder %s1011_s17, %s1007_s16 }
   0x8   : > { %p98_p1 = scmp.eq.s32.totalorder %s97_s23, 0  ;;  %p108_p2 = scmp.eq.s32.totalorder %s1015_s18, 0 }
   0x9   : > { %p113_p3 = scmp.ne.s32.totalorder %s1007_s16, %s1003_s15  ;;  %p114_p4 = scmp.eq.s32.totalorder %s1073_s19, 0 }
   0xa   : > { %s1089_s24 = scalar_select %p98_p1, %s1011_s17, %s100_s22  }
   0xb   : > { %p1091_p5 = por %p108_p2, %p107_p0  ;;  %p1095_p6 = por %p114_p4, %p113_p3 }
   0xc   : > { %p137_p7 = scmp.eq.s32.totalorder %s1073_s19, 1  ;;  %p143_p8 = scmp.eq.s32.totalorder %s821_s20, 1 }
   0xd   : > { %s1378_s26 = scalar_select %p1095_p6, 1, 0 }
   0xe   : > { %p879_p10 = scmp.lt.s32.totalorder %s1015_s18, 2  ;;  %p1102_p11 = por %p137_p7, %p107_p0 }
   0xf   : > { %p1106_p12 = por %p143_p8, %p113_p3  ;;  %s182_s29 = sand.u32 1, %s1011_s17  }
  0x10   : > { %s1379_s27 = scalar_select %p1102_p11, 1, 0 }
  0x11   : > { %s1380_s28 = scalar_select %p1106_p12, 1, 0 }
  0x12   : > { %s843_s30 = sshll.u32 %s1015_s18, 8  ;;  %s824_s5 = sshll.u32 %s182_s29, 7 }
  0x13   : > { %s1115_s8 = scalar_lea.hbm %s1373_s3, %s843_s30  ;;  %s186_s9 = scalar_lea.vmem [#allocation2], %s824_s5 }
  0x14   : > { %s193_s10 = sshll.u32 %s186_s9, 4  ;;  %p1119_p13 = pnand %p879_p10, %p1091_p5  ;;  %s1123_s10 = int_to_ptr.vmem [resolvable:$true] %s193_s10 }
  0x15   : > { %s1126_s12 = scalar_lea.sflag [#allocation3], %s182_s29  ;;  %s923_s13 = scalar_lea.hbm %s1115_s8, 2048 }
  0x16   : > { %p924_p1 = scmp.ne.s32.totalorder %s1115_s8, %s923_s13  ;;  %p925_p2 = pneg %p1119_p13 }
  0x17   : > { %s928_s22 = scalar_lea.hbm %s1373_s3, 4096  ;;  %p929_p5 = scmp.lt.s32.totalorder %s1115_s8, %s1373_s3 }
  0x18   : > { %p926_p3 = pnand %p925_p2, %p924_p1  ;;  %p930_p7 = scmp.lt.s32.totalorder %s928_s22, %s923_s13 }
  0x1a   : > { %p927_p4 = pneg %p926_p3  ;;  %p931_p8 = por %p930_p7, %p929_p5 }
  0x1c   : > { %p932_p10 = pnand %p931_p8, %p927_p4 }
  0x1e   : > { %935 = shalt.err (!%p932_p10)
}
  0x1f   : > { %s936_s29 = scalar_lea.vmem %s1123_s10, 2048  ;;  %s1017_s30 = smov [#allocation2]  }
  0x20   : > { %p937_p9 = scmp.ne.s32.totalorder %s1123_s10, %s936_s29  ;;  %s941_s5 = sshll.u32 %s1017_s30, 4  ;;  %s942_s5 = int_to_ptr.vmem [resolvable:$false] %s941_s5 }
  0x21   : > { %s943_s6 = scalar_lea.vmem %s942_s5, 4096  ;;  %p944_p3 = scmp.lt.s32.totalorder %s1123_s10, %s942_s5 }
  0x22   : > { %p939_p0 = pnand %p937_p9, %p925_p2  ;;  %p945_p12 = scmp.lt.s32.totalorder %s943_s6, %s936_s29 }
  0x24   : > { %p940_p1 = pneg %p939_p0  ;;  %p946_p11 = por %p945_p12, %p944_p3 }
  0x26   : > { %p947_p6 = pnand %p946_p11, %p940_p1 }
  0x28   : > { %950 = shalt.err (!%p947_p6)
}
  0x29   : > { %s1018_s7 = smov 512   ;;  %s1019_s9 = smov 256  }
  0x2a   : > { %s1020_s13 = smov 16   ;;  %p201_p9 = scmp.lt.s32.totalorder %s1015_s18, 3 }
  0x2b   : > { %874 = dma.hbm_to_vmem [thread:$0]  (!%p1119_p13), %s1115_s8, 2048, %s1123_s10, %s1126_s12, %s1018_s7, %s1019_s9, %s1020_s13  }
  0x2c   : > { %p1382_p0 = scmp.ge.s32.totalorder %s1015_s18, 1 }
  0x2e   : > { %p202_p2 = pnand %p1382_p0, %p201_p9 }
  0x2f   : > { %s1151_s14 = sand.u32 (!%p202_p2), 1, %s1007_s16   ;;  %p1383_p6 = scmp.ne.s32.totalorder (!%p202_p2), %s1378_s26, 0 }
  0x30   : > { %205 = sbr.rel (%p202_p2) target bundleno = 429 (0x1ad), region = 36  ;;  %s828_s20 = sshll.u32 (!%p202_p2), %s1151_s14, 7 }
  0x31   : > { %s208_s22 = scalar_lea.sflag (!%p202_p2), [#allocation3], %s1151_s14  ;;  %s1157_s23 = scalar_lea.vmem (!%p202_p2), [#allocation2], %s828_s20 }
  0x35   : > { %994 = dma.done.wait (%p1383_p6), %s208_s22, 2048  }
  0x36   : > { %996 = vsyncadd (%p1383_p6), %s208_s22, 4294965248  ;;  %p246_p11 = scmp.lt.s32.totalorder %s1073_s19, 1  ;;  %v1021_v0 = vmov 0.0   ;;  %vm1022_vm0 = vmmov 0   ;;  %vm377_vm1 = vcmask 1040384   ;;  %v1169_v3 = vld [vmem:[%s1157_s23] sm:$0xff] }
  0x37   : > { %853 = vmatprep.subr.mxu0 %v1021_v0  ;;  %857 = vmatprep.mubr.msk.f32.mxu0 %vm1022_vm0, %v1021_v0  ;;  %v1173_v4 = vld [vmem:[%s1157_s23 + $0x8] sm:$0xff]  ;;  %v370_v5 = vld [vmem:[%s1370_s0] sm:$0xff]  ;;  %vm373_vm2 = vcmask 72704   ;;  %v1187_v9 = vld [vmem:[%s1157_s23 + $0x10] sm:$0xff]  ;;  %s1291_s7 = scalar_lea.vmem [#allocation5], %s828_s20  ;;  %s846_s9 = sshll.u32 %s1073_s19, 8 }
  0x38   : > { %s247_s8 = scalar_select %p246_p11, %s1073_s19, 1  ;;  %860 = vmatprep.subr.mxu1 %v1021_v0  ;;  %864 = vmatprep.mubr.msk.f32.mxu1 %vm1022_vm0, %v1021_v0  ;;  %v1179_v6 = vld [vmem:[%s1157_s23 + $0x20] sm:$0xff]  ;;  %v272_v7 = vadd.f32 %v1173_v4, %v1169_v3  ;;  %v1184_v8 = vld [vmem:[%s1157_s23 + $0x28] sm:$0xff]  ;;  %v1190_v10 = vld [vmem:[%s1157_s23 + $0x18] sm:$0xff] }
  0x39   : > { %v278_v11 = vadd.f32 %v1184_v8, %v1179_v6  ;;  %v1198_v12 = vld [vmem:[%s1157_s23 + $0x30] sm:$0xff]  ;;  %v1201_v13 = vld [vmem:[%s1157_s23 + $0x38] sm:$0xff]  ;;  %v275_v14 = vadd.f32 %v1190_v10, %v1187_v9  ;;  %v1209_v16 = vld [vmem:[%s1157_s23 + $0x40] sm:$0xff]  ;;  %s724_s13 = sshll.u32 %s1291_s7, 4  ;;  %s1321_s22 = scalar_lea.hbm %s1374_s4, %s846_s9  ;;  %s1325_s13 = int_to_ptr.vmem [resolvable:$true] %s724_s13 }
  0x3a   : > { %s844_s10 = sshll.u32 %s247_s8, 4  ;;  %273 = vadd.xlane.f32.xlu0 %v272_v7  ;;  %v281_v15 = vadd.f32 %v1201_v13, %v1198_v12  ;;  %v1212_v17 = vld [vmem:[%s1157_s23 + $0x48] sm:$0xff]  ;;  %v1215_v19 = vld [vmem:[%s1157_s23 + $0x50] sm:$0xff]  ;;  %v1218_v20 = vld [vmem:[%s1157_s23 + $0x58] sm:$0xff]  ;;  %s951_s8 = scalar_lea.vmem %s1325_s13, 2048 }
  0x3b   : > { %s250_s12 = scalar_lea.vmem %s1371_s1, %s844_s10  ;;  %s255_s6 = scalar_lea.vmem %s1372_s2, %s844_s10  ;;  %279 = vadd.xlane.f32.xlu1 %v278_v11  ;;  %v284_v22 = vadd.f32 %v1212_v17, %v1209_v16  ;;  %v287_v23 = vadd.f32 %v1218_v20, %v1215_v19  ;;  %v1226_v24 = vld [vmem:[%s1157_s23 + $0x60] sm:$0xff]  ;;  %v1229_v25 = vld [vmem:[%s1157_s23 + $0x68] sm:$0xff]  ;;  %v1233_v26 = vld [vmem:[%s1157_s23 + $0x70] sm:$0xff] }
  0x3c   : > { %v372_v1 = vld [vmem:[%s250_s12 + $0x8] sm:$0x1]  ;;  %v371_v2 = vld [vmem:[%s250_s12] sm:$0xff]  ;;  %v1236_v27 = vld [vmem:[%s1157_s23 + $0x78] sm:$0xff]  ;;  %v290_v28 = vadd.f32 %v1229_v25, %v1226_v24  ;;  %s711_s23 = scalar_lea.sflag [#allocation4], %s1151_s14  ;;  %p952_p12 = scmp.ne.s32.totalorder %s1325_s13, %s951_s8 }
  0x3d   : > { %854 = vmatpush3.msk.msra.mxu0 %vm377_vm1, %v372_v1  ;;  %v452_v18 = vld [vmem:[%s255_s6 + $0x8] sm:$0x1]  ;;  %v451_v21 = vld [vmem:[%s255_s6] sm:$0xff]  ;;  %v293_v29 = vadd.f32 %v1236_v27, %v1233_v26  ;;  %p1384_p13 = scmp.ne.s32.totalorder %s1379_s27, 0  ;;  %s1023_s10 = smov [#allocation5]  }
  0x3e   : > { %855 = vmatprep.subr.mxu0 %v1021_v0  ;;  %861 = vmatpush3.msk.msra.mxu1 %vm377_vm1, %v452_v18  ;;  %s955_s11 = sshll.u32 %s1023_s10, 4  ;;  %s956_s11 = int_to_ptr.vmem [resolvable:$false] %s955_s11 }
  0x3f   : > { %856 = vmatpush3.msra.mxu0 %v371_v2  ;;  %862 = vmatprep.subr.mxu1 %v1021_v0  ;;  %p953_p4 = pnand %p952_p12, %p1384_p13  ;;  %s957_s26 = scalar_lea.vmem %s956_s11, 4096 }
  0x40   : > { %858 = vmatmul.mubr.msk.f32.vlgmr.msra.gmra.mxu0 %vm373_vm2, %v370_v5  ;;  %276 = vadd.xlane.f32.xlu0 %v275_v14  ;;  %p958_p7 = scmp.lt.s32.totalorder %s1325_s13, %s956_s11  ;;  %p959_p8 = scmp.lt.s32.totalorder %s957_s26, %s951_s8 }
  0x41   : > { %863 = vmatpush3.msra.mxu1 %v451_v21  ;;  %282 = vadd.xlane.f32.xlu1 %v281_v15  ;;  %p954_p5 = pneg %p953_p4 }
  0x42   : > { %865 = vmatmul.mubr.msk.f32.vlgmr.msra.gmra.mxu1 %vm373_vm2, %v370_v5  ;;  %p960_p10 = por %p959_p8, %p958_p7 }
  0x44   : > { %285 = vadd.xlane.f32.xlu0 %v284_v22  ;;  %p961_p1 = pnand %p960_p10, %p954_p5 }
  0x45   : > { %288 = vadd.xlane.f32.xlu1 %v287_v23 }
  0x48   : > { %291 = vadd.xlane.f32.xlu0 %v290_v28 }
  0x49   : > { %294 = vadd.xlane.f32.xlu1 %v293_v29 }
  0xc3   : > { %v274_v30 = vpop.xlane.xlu0 %273 }
  0xc4   : > { %v280_v31 = vpop.xlane.xlu1 %279 }
  0xc9   : > { %v277_v32 = vpop.xlane.xlu0 %276 }
  0xca   : > { %v296_v33 = vadd.f32 %v277_v32, %v274_v30  ;;  %v283_v34 = vpop.xlane.xlu1 %282 }
  0xcc   : > { %v297_v35 = vadd.f32 %v296_v33, %v280_v31 }
  0xcd   : > { %v286_v36 = vpop.xlane.xlu0 %285 }
  0xce   : > { %v298_v37 = vadd.f32 %v297_v35, %v283_v34  ;;  %v289_v38 = vpop.xlane.xlu1 %288 }
  0xd0   : > { %v299_v39 = vadd.f32 %v298_v37, %v286_v36 }
  0xd1   : > { %v292_v40 = vpop.xlane.xlu0 %291 }
  0xd2   : > { %v300_v41 = vadd.f32 %v299_v39, %v289_v38  ;;  %v295_v42 = vpop.xlane.xlu1 %294  ;;  %v526_v38 = vlaneseq }
  0xd4   : > { %v301_v43 = vadd.f32 %v300_v41, %v292_v40  ;;  %v527_v39 = vshrl.u32 %v526_v38, 7 }
  0xd6   : > { %v302_v44 = vadd.f32 %v301_v43, %v295_v42  ;;  %v535_v40 = vsub.s32 1, %v527_v39  ;;  %v528_v41 = vsub.s32 0, %v527_v39  ;;  %v542_v42 = vsub.s32 2, %v527_v39 }
  0xd8   : > { %v1242_v45 = vmul.f32 0.00048828125, %v302_v44 }
  0xda   : > { %v306_v46 = vsub.f32 %v1187_v9, %v1242_v45  ;;  %v307_v47 = vsub.f32 %v1190_v10, %v1242_v45  ;;  %v304_v48 = vsub.f32 %v1169_v3, %v1242_v45  ;;  %v305_v49 = vsub.f32 %v1173_v4, %v1242_v45 }
  0xdb   : > { %v310_v50 = vsub.f32 %v1198_v12, %v1242_v45  ;;  %v311_v51 = vsub.f32 %v1201_v13, %v1242_v45  ;;  %v308_v52 = vsub.f32 %v1179_v6, %v1242_v45  ;;  %v309_v53 = vsub.f32 %v1184_v8, %v1242_v45 }
  0xdc   : > { %v322_v54 = vmul.f32 %v306_v46, %v306_v46  ;;  %v323_v55 = vmul.f32 %v307_v47, %v307_v47  ;;  %v320_v56 = vmul.f32 %v304_v48, %v304_v48  ;;  %v321_v57 = vmul.f32 %v305_v49, %v305_v49 }
  0xdd   : > { %v326_v58 = vmul.f32 %v310_v50, %v310_v50  ;;  %v327_v59 = vmul.f32 %v311_v51, %v311_v51  ;;  %v324_v60 = vmul.f32 %v308_v52, %v308_v52  ;;  %v325_v61 = vmul.f32 %v309_v53, %v309_v53 }
  0xde   : > { %v339_v62 = vadd.f32 %v323_v55, %v322_v54  ;;  %v336_v63 = vadd.f32 %v321_v57, %v320_v56  ;;  %v314_v0 = vsub.f32 %v1215_v19, %v1242_v45  ;;  %v315_v1 = vsub.f32 %v1218_v20, %v1242_v45 }
  0xdf   : > { %v312_v2 = vsub.f32 %v1209_v16, %v1242_v45  ;;  %v313_v5 = vsub.f32 %v1212_v17, %v1242_v45  ;;  %v345_v7 = vadd.f32 %v327_v59, %v326_v58  ;;  %v342_v11 = vadd.f32 %v325_v61, %v324_v60 }
  0xe0   : > { %340 = vadd.xlane.f32.xlu1 %v339_v62  ;;  %337 = vadd.xlane.f32.xlu0 %v336_v63  ;;  %v330_v14 = vmul.f32 %v314_v0, %v314_v0  ;;  %v331_v15 = vmul.f32 %v315_v1, %v315_v1  ;;  %v318_v21 = vsub.f32 %v1233_v26, %v1242_v45  ;;  %v556_v48 = vsub.s32 4, %v527_v39 }
  0xe1   : > { %v328_v18 = vmul.f32 %v312_v2, %v312_v2  ;;  %v329_v22 = vmul.f32 %v313_v5, %v313_v5  ;;  %v319_v23 = vsub.f32 %v1236_v27, %v1242_v45  ;;  %v316_v28 = vsub.f32 %v1226_v24, %v1242_v45 }
  0xe2   : > { %v317_v29 = vsub.f32 %v1229_v25, %v1242_v45  ;;  %v351_v30 = vadd.f32 %v331_v15, %v330_v14  ;;  %v334_v31 = vmul.f32 %v318_v21, %v318_v21  ;;  %v549_v50 = vsub.s32 3, %v527_v39 }
  0xe3   : > { %v348_v32 = vadd.f32 %v329_v22, %v328_v18  ;;  %v335_v33 = vmul.f32 %v319_v23, %v319_v23  ;;  %v332_v34 = vmul.f32 %v316_v28, %v316_v28  ;;  %v570_v55 = vsub.s32 6, %v527_v39 }
  0xe4   : > { %346 = vadd.xlane.f32.xlu1 %v345_v7  ;;  %343 = vadd.xlane.f32.xlu0 %v342_v11  ;;  %v333_v35 = vmul.f32 %v317_v29, %v317_v29  ;;  %v563_v56 = vsub.s32 5, %v527_v39  ;;  %v577_v59 = vsub.s32 7, %v527_v39 }
  0xe5   : > { %v357_v36 = vadd.f32 %v335_v33, %v334_v31 }
  0xe6   : > { %v354_v37 = vadd.f32 %v333_v35, %v332_v34 }
  0xe8   : > { %352 = vadd.xlane.f32.xlu1 %v351_v30  ;;  %349 = vadd.xlane.f32.xlu0 %v348_v32 }
  0xec   : > { %358 = vadd.xlane.f32.xlu1 %v357_v36  ;;  %355 = vadd.xlane.f32.xlu0 %v354_v37 }
 0x100   : > { %v447_v43 = vpop.f32.mrf.mxu0 }
 0x101   : > { %v536_v44 = vrot.slane %v447_v43, %v535_v40  ;;  %v529_v46 = vrot.slane %v447_v43, %v528_v41  ;;  %v543_v49 = vrot.slane %v447_v43, %v542_v42  ;;  %v557_v52 = vrot.slane %v447_v43, %v556_v48 }
 0x102   : > { %v859_v47 = vpop.f32.mrf.mxu0  ;;  %v522_v51 = vpop.f32.mrf.mxu1  ;;  %v550_v53 = vrot.slane %v447_v43, %v549_v50  ;;  %v571_v57 = vrot.slane %v447_v43, %v570_v55  ;;  %v564_v58 = vrot.slane %v447_v43, %v563_v56  ;;  %v578_v61 = vrot.slane %v447_v43, %v577_v59 }
 0x103   : > { %538 = vbcast.lane.b32.xlu1 %v536_v44, 256  ;;  %531 = vbcast.lane.b32.xlu0 %v529_v46, 256  ;;  %v593_v60 = vrot.slane %v522_v51, %v528_v41  ;;  %v607_v62 = vrot.slane %v522_v51, %v542_v42  ;;  %v600_v63 = vrot.slane %v522_v51, %v535_v40 }
 0x104   : > { %v866_v54 = vpop.f32.mrf.mxu1  ;;  %v621_v0 = vrot.slane %v522_v51, %v556_v48  ;;  %v614_v1 = vrot.slane %v522_v51, %v549_v50  ;;  %v635_v2 = vrot.slane %v522_v51, %v570_v55  ;;  %v628_v5 = vrot.slane %v522_v51, %v563_v56 }
 0x105   : > { %v642_v7 = vrot.slane %v522_v51, %v577_v59 }
 0x107   : > { %545 = vbcast.lane.b32.xlu1 %v543_v49, 256  ;;  %559 = vbcast.lane.b32.xlu0 %v557_v52, 256 }
 0x10b   : > { %552 = vbcast.lane.b32.xlu1 %v550_v53, 256  ;;  %573 = vbcast.lane.b32.xlu0 %v571_v57, 256 }
 0x10f   : > { %566 = vbcast.lane.b32.xlu1 %v564_v58, 256  ;;  %595 = vbcast.lane.b32.xlu0 %v593_v60, 256 }
 0x113   : > { %580 = vbcast.lane.b32.xlu1 %v578_v61, 256  ;;  %609 = vbcast.lane.b32.xlu0 %v607_v62, 256 }
 0x117   : > { %602 = vbcast.lane.b32.xlu1 %v600_v63, 256  ;;  %623 = vbcast.lane.b32.xlu0 %v621_v0, 256 }
 0x11b   : > { %616 = vbcast.lane.b32.xlu1 %v614_v1, 256  ;;  %637 = vbcast.lane.b32.xlu0 %v635_v2, 256 }
 0x11f   : > { %630 = vbcast.lane.b32.xlu1 %v628_v5, 256 }
 0x123   : > { %644 = vbcast.lane.b32.xlu1 %v642_v7, 256 }
 0x169   : > { %v341_v11 = vpop.xlane.xlu1 %340  ;;  %v338_v14 = vpop.xlane.xlu0 %337 }
 0x16a   : > { %v360_v15 = vadd.f32 %v341_v11, %v338_v14 }
 0x16d   : > { %v347_v18 = vpop.xlane.xlu1 %346  ;;  %v344_v21 = vpop.xlane.xlu0 %343 }
 0x16e   : > { %v361_v22 = vadd.f32 %v360_v15, %v344_v21 }
 0x170   : > { %v362_v23 = vadd.f32 %v361_v22, %v347_v18 }
 0x171   : > { %v353_v28 = vpop.xlane.xlu1 %352  ;;  %v350_v29 = vpop.xlane.xlu0 %349 }
 0x172   : > { %v363_v30 = vadd.f32 %v362_v23, %v350_v29 }
 0x174   : > { %v364_v31 = vadd.f32 %v363_v30, %v353_v28 }
 0x175   : > { %v359_v32 = vpop.xlane.xlu1 %358  ;;  %v356_v33 = vpop.xlane.xlu0 %355 }
 0x176   : > { %v365_v34 = vadd.f32 %v364_v31, %v356_v33 }
 0x178   : > { %v366_v35 = vadd.f32 %v365_v34, %v359_v32 }
 0x179   : > { %v539_v36 = vpop.permute.xlu1 %538  ;;  %v532_v37 = vpop.permute.xlu0 %531 }
 0x17a   : > { %v367_v38 = vmul.f32 0.00048828125, %v366_v35 }
 0x17c   : > { %v368_v39 = vadd.f32 1e-05, %v367_v38 }
 0x17d   : > { %v546_v40 = vpop.permute.xlu1 %545  ;;  %v560_v41 = vpop.permute.xlu0 %559 }
 0x17e   : > { %921 = vrsqrt.f32 %v368_v39 }
 0x181   : > { %v553_v42 = vpop.permute.xlu1 %552  ;;  %v574_v43 = vpop.permute.xlu0 %573 }
 0x185   : > { %v567_v44 = vpop.permute.xlu1 %566  ;;  %v596_v46 = vpop.permute.xlu0 %595 }
 0x189   : > { %v581_v47 = vpop.permute.xlu1 %580  ;;  %v610_v48 = vpop.permute.xlu0 %609 }
 0x18b   : > { %v922_v49 = vpop.eup %921 }
 0x18c   : > { %v583_v50 = vmul.f32 %v922_v49, %v539_v36  ;;  %v582_v51 = vmul.f32 %v922_v49, %v532_v37  ;;  %v584_v52 = vmul.f32 %v922_v49, %v546_v40  ;;  %v586_v53 = vmul.f32 %v922_v49, %v560_v41 }
 0x18d   : > { %v585_v54 = vmul.f32 %v922_v49, %v553_v42  ;;  %v588_v55 = vmul.f32 %v922_v49, %v574_v43  ;;  %v587_v56 = vmul.f32 %v922_v49, %v567_v44  ;;  %v603_v57 = vpop.permute.xlu1 %602  ;;  %v624_v58 = vpop.permute.xlu0 %623 }
 0x18e   : > { %v646_v59 = vmul.f32 %v582_v51, %v1242_v45  ;;  %v662_v60 = vmul.f32 %v582_v51, %v1169_v3  ;;  %v663_v61 = vmul.f32 %v582_v51, %v1173_v4  ;;  %v648_v62 = vmul.f32 %v584_v52, %v1242_v45 }
 0x18f   : > { %v666_v63 = vmul.f32 %v584_v52, %v1179_v6  ;;  %v667_v0 = vmul.f32 %v584_v52, %v1184_v8  ;;  %v647_v1 = vmul.f32 %v583_v50, %v1242_v45  ;;  %v664_v2 = vmul.f32 %v583_v50, %v1187_v9 }
 0x190   : > { %v654_v5 = vsub.f32 %v596_v46, %v646_v59  ;;  %v656_v7 = vsub.f32 %v610_v48, %v648_v62  ;;  %v665_v11 = vmul.f32 %v583_v50, %v1190_v10  ;;  %v650_v14 = vmul.f32 %v586_v53, %v1242_v45 }
 0x191   : > { %v655_v3 = vsub.f32 %v603_v57, %v647_v1  ;;  %v670_v4 = vmul.f32 %v586_v53, %v1209_v16  ;;  %v671_v15 = vmul.f32 %v586_v53, %v1212_v17  ;;  %v617_v18 = vpop.permute.xlu1 %616  ;;  %v649_v6 = vmul.f32 %v585_v54, %v1242_v45  ;;  %v638_v10 = vpop.permute.xlu0 %637 }
 0x192   : > { %v678_v8 = vadd.f32 %v662_v60, %v654_v5  ;;  %v679_v21 = vadd.f32 %v663_v61, %v654_v5  ;;  %v682_v22 = vadd.f32 %v666_v63, %v656_v7  ;;  %v683_v23 = vadd.f32 %v667_v0, %v656_v7 }
 0x193   : > { %v680_v9 = vadd.f32 %v664_v2, %v655_v3  ;;  %v681_v28 = vadd.f32 %v665_v11, %v655_v3  ;;  %v658_v29 = vsub.f32 %v624_v58, %v650_v14  ;;  %v657_v30 = vsub.f32 %v617_v18, %v649_v6 }
 0x194   : > { %694 = vst [vmem:[%s1291_s7] sm:$0xff] %v678_v8  ;;  %695 = vst [vmem:[%s1291_s7 + $0x8] sm:$0xff] %v679_v21  ;;  %v589_v16 = vmul.f32 %v922_v49, %v581_v47  ;;  %v668_v17 = vmul.f32 %v585_v54, %v1198_v12  ;;  %v669_v31 = vmul.f32 %v585_v54, %v1201_v13 }
 0x195   : > { %698 = vst [vmem:[%s1291_s7 + $0x20] sm:$0xff] %v682_v22  ;;  %699 = vst [vmem:[%s1291_s7 + $0x28] sm:$0xff] %v683_v23  ;;  %v652_v32 = vmul.f32 %v588_v55, %v1242_v45  ;;  %v686_v33 = vadd.f32 %v670_v4, %v658_v29  ;;  %v687_v34 = vadd.f32 %v671_v15, %v658_v29  ;;  %v631_v36 = vpop.permute.xlu1 %630 }
 0x196   : > { %696 = vst [vmem:[%s1291_s7 + $0x10] sm:$0xff] %v680_v9  ;;  %697 = vst [vmem:[%s1291_s7 + $0x18] sm:$0xff] %v681_v28  ;;  %v674_v35 = vmul.f32 %v588_v55, %v1226_v24  ;;  %v651_v37 = vmul.f32 %v587_v56, %v1242_v45  ;;  %v684_v38 = vadd.f32 %v668_v17, %v657_v30 }
 0x197   : > { %v685_v39 = vadd.f32 %v669_v31, %v657_v30  ;;  %v675_v12 = vmul.f32 %v588_v55, %v1229_v25  ;;  %v660_v13 = vsub.f32 %v638_v10, %v652_v32  ;;  %702 = vst [vmem:[%s1291_s7 + $0x40] sm:$0xff] %v686_v33  ;;  %703 = vst [vmem:[%s1291_s7 + $0x48] sm:$0xff] %v687_v34 }
 0x198   : > { %v659_v40 = vsub.f32 %v631_v36, %v651_v37  ;;  %v672_v41 = vmul.f32 %v587_v56, %v1215_v19  ;;  %v673_v42 = vmul.f32 %v587_v56, %v1218_v20  ;;  %700 = vst [vmem:[%s1291_s7 + $0x30] sm:$0xff] %v684_v38  ;;  %v653_v44 = vmul.f32 %v589_v16, %v1242_v45 }
 0x199   : > { %701 = vst [vmem:[%s1291_s7 + $0x38] sm:$0xff] %v685_v39  ;;  %v690_v24 = vadd.f32 %v674_v35, %v660_v13  ;;  %v691_v43 = vadd.f32 %v675_v12, %v660_v13  ;;  %v645_v47 = vpop.permute.xlu1 %644  ;;  %v676_v20 = vmul.f32 %v589_v16, %v1233_v26  ;;  %v677_v48 = vmul.f32 %v589_v16, %v1236_v27 }
 0x19a   : > { %v688_v25 = vadd.f32 %v672_v41, %v659_v40  ;;  %v689_v46 = vadd.f32 %v673_v42, %v659_v40  ;;  %v661_v19 = vsub.f32 %v645_v47, %v653_v44 }
 0x19b   : > { %706 = vst [vmem:[%s1291_s7 + $0x60] sm:$0xff] %v690_v24  ;;  %707 = vst [vmem:[%s1291_s7 + $0x68] sm:$0xff] %v691_v43 }
 0x19c   : > { %704 = vst [vmem:[%s1291_s7 + $0x50] sm:$0xff] %v688_v25  ;;  %705 = vst [vmem:[%s1291_s7 + $0x58] sm:$0xff] %v689_v46  ;;  %v692_v45 = vadd.f32 %v676_v20, %v661_v19  ;;  %v693_v49 = vadd.f32 %v677_v48, %v661_v19 }
 0x19e   : > { %708 = vst [vmem:[%s1291_s7 + $0x70] sm:$0xff] %v692_v45  ;;  %709 = vst [vmem:[%s1291_s7 + $0x78] sm:$0xff] %v693_v49 }
 0x19f   : > { %964 = shalt.err (!%p961_p1)
}
 0x1a0   : > { %s965_s12 = scalar_lea.hbm %s1321_s22, 2048  ;;  %s969_s30 = scalar_lea.hbm %s1374_s4, 4096 }
 0x1a1   : > { %p966_p3 = scmp.ne.s32.totalorder %s1321_s22, %s965_s12  ;;  %p970_p2 = scmp.lt.s32.totalorder %s1321_s22, %s1374_s4 }
 0x1a2   : > { %p971_p6 = scmp.lt.s32.totalorder %s969_s30, %s965_s12 }
 0x1a3   : > { %p967_p9 = pnand %p966_p3, %p1384_p13 }
 0x1a4   : > { %p972_p11 = por %p971_p6, %p970_p2 }
 0x1a5   : > { %p968_p0 = pneg %p967_p9 }
 0x1a7   : > { %p973_p12 = pnand %p972_p11, %p968_p0 }
 0x1a9   : > { %976 = shalt.err (!%p973_p12)
}
 0x1aa   : > { %s1024_s7 = smov 256   ;;  %s1025_s9 = smov 512  }
 0x1ab   : > { %s1026_s19 = smov 16  }
 0x1ac   : > { %869 = dma.vmem_to_hbm [thread:$0]  (%p1384_p13), %s1325_s13, 2048, %s1321_s22, %s711_s23, %s1024_s7, %s1025_s9, %s1026_s19  }
 0x1ad PF: > { %s739_s20 = sand.u32 1, %s1003_s15   ;;  %p1385_p4 = scmp.ne.s32.totalorder %s1380_s28, 0 }
 0x1ae   : > { %p1386_p5 = scmp.ge.s32.totalorder %s1015_s18, 2  ;;  %s740_s8 = scalar_lea.sflag [#allocation4], %s739_s20 }
 0x1b0   : > { %p876_p7 = pnand %p1386_p5, %p1385_p4 }
 0x1b2   : > { %p877_p8 = pneg %p876_p7 }
 0x1b4   : > { %998 = dma.done.wait (%p877_p8), %s740_s8, 2048  }
 0x1b5   : > { %1000 = vsyncadd (%p877_p8), %s740_s8, 4294965248  ;;  %p17_p10 = scmp.ge.s32.totalorder %s1077_s21, 4   ;;  %s1387_s15 = smov %s1007_s16 }
 0x1b6   : > { %s1388_s16 = smov %s1011_s17  ;;  %s1389_s17 = smov %s1089_s24 }
 0x1b7   : > { %s1390_s18 = smov %s1077_s21  ;;  %19 = sbr.rel (!%p17_p10) target bundleno = 5 (0x5), region = 87 }
 0x1bc   :  { %745 = vsyncpa [#allocation3], 1 }
 0x1bd   :  { %747 = vsyncpa [#allocation3 + $0x1], 1 }
 0x1be   :  { %748 = vsyncpa [#allocation4], 1 }
 0x1bf   :  { %750 = vsyncpa [#allocation4 + $0x1], 1 }

</bundles_post_ra>
